<compile_context>
chip_gen: v6e
topology: v6e:2x2x1
jax: 0.10.0
libtpu: 0.0.40
codegen_flags: <defaults>
</compile_context>

<pallas_src>
import math
import itertools

import jax
import jax.numpy as jnp
import numpy as np
from jax.experimental import pallas as pl
from jax.experimental.pallas import tpu as pltpu


def _round_up(x, m):
    return ((x + m - 1) // m) * m


def _mxu_width():
    # v6e / v7x MXUs are 256x256; v5e (and older) are 128x128.
    try:
        kind = jax.devices()[0].device_kind.lower()
    except Exception:
        kind = ""
    for tag in ("v2", "v3", "v4", "v5"):
        if tag in kind:
            return 128
    return 256


def _pad_dim(x, mxu):
    # Always lane-dense (multiple of 128); use 256 multiples on 256-wide MXUs
    # only when the dim already exceeds 128 (don't inflate tiny channel dims).
    if x <= 128 or mxu == 128:
        return _round_up(x, 128)
    return _round_up(x, mxu)


def _vmem_budget():
    cap = None
    try:
        cap = getattr(pltpu.get_tpu_info(), "vmem_capacity_bytes", None)
    except Exception:
        cap = None
    if not cap:
        try:
            kind = jax.devices()[0].device_kind.lower()
        except Exception:
            kind = ""
        cap = 64 * 1024 * 1024 if "v7" in kind else 128 * 1024 * 1024
    # ~48 MiB working-set budget on v7x (64 MiB VMEM), ~96 MiB on v5e/v6e.
    return int(cap * 3 // 4), int(cap)


# ----------------------------------------------------------------------------
# Pallas kernel: out_tile = sum_kc g_tile @ w_tile + bias   (f32 accumulation)
#   g_ref  : (TN, TKC)        gathered features (K folded into the contraction)
#   w_ref  : (TKC, Cout_pad)  flattened weights
#   b_ref  : (1, Cout_pad)    f32 bias
#   o_ref  : (TN, Cout_pad)   network-dtype, lane-dense output tile
#   acc_ref: (TN, Cout_pad)   f32 accumulator scratch
# ----------------------------------------------------------------------------
def _conv_mm_kernel(g_ref, w_ref, b_ref, o_ref, acc_ref):
    @pl.when(pl.program_id(1) == 0)
    def _():
        acc_ref[...] = jnp.zeros_like(acc_ref)

    acc_ref[...] += jnp.dot(g_ref[...], w_ref[...],
                            preferred_element_type=jnp.float32)

    @pl.when(pl.program_id(1) == pl.num_programs(1) - 1)
    def _():
        o_ref[...] = (acc_ref[...] + b_ref[...]).astype(o_ref.dtype)


def _pallas_conv_matmul(g2, w2, bias2, out_dtype, *, tn, tkc, vmem_limit=None):
    """g2: (N_pad, Kc_pad), w2: (Kc_pad, Cout_pad), bias2: (1, Cout_pad)."""
    n_pad, kc_pad = g2.shape
    cout_pad = w2.shape[-1]

    cp_kwargs = dict(dimension_semantics=("parallel", "arbitrary"))
    if vmem_limit is not None:
        cp_kwargs["vmem_limit_bytes"] = int(vmem_limit)

    return pl.pallas_call(
        _conv_mm_kernel,
        out_shape=jax.ShapeDtypeStruct((n_pad, cout_pad), out_dtype),
        grid_spec=pltpu.PrefetchScalarGridSpec(
            num_scalar_prefetch=0,
            grid=(n_pad // tn, kc_pad // tkc),
            in_specs=[
                pl.BlockSpec((tn, tkc), lambda i, k: (i, k)),
                pl.BlockSpec((tkc, cout_pad), lambda i, k: (k, 0)),
                pl.BlockSpec((1, cout_pad), lambda i, k: (0, 0)),
            ],
            out_specs=pl.BlockSpec((tn, cout_pad), lambda i, k: (i, 0)),
            scratch_shapes=[pltpu.VMEM((tn, cout_pad), jnp.float32)],
        ),
        compiler_params=pltpu.CompilerParams(**cp_kwargs),
    )(g2, w2, bias2)


# ----------------------------------------------------------------------------
# Glue: kernel offsets + kernel-map gather (torchsparse builds this with a
# CUDA hash table; here it is a sorted-key lookup, O(K*N log N)).
# ----------------------------------------------------------------------------
def _kernel_offsets(kernel_size, dilation):
    ks = kernel_size
    # TODO(synk): even kernel_size offset convention not verified vs torchsparse.
    rng = np.arange(-(ks // 2), ks // 2 + 1) if ks % 2 == 1 else np.arange(0, ks)
    offs = np.array(list(itertools.product(rng, rng, rng)), dtype=np.int32)
    return offs * dilation  # (K, 3)


def _build_gather_indices(coords, offsets_np):
    """coords: (N, 4) int32 (x,y,z,batch); offsets_np: (K, 3) numpy int32.

    Returns idx (N, K) int32 where idx[i, k] = j such that
    coords[j, :3] == coords[i, :3] + offsets[k] and batches match, else N
    (index of an all-zero padding row).  Assumes unique coordinates per batch
    (torchsparse's hash map makes the same assumption); duplicates resolve to
    a single (leftmost sorted) entry.
    """
    xyz = coords[:, :3].astype(jnp.int32)
    batch = coords[:, 3].astype(jnp.int32)
    n = xyz.shape[0]
    K = offsets_np.shape[0]
    offsets = jnp.asarray(offsets_np, dtype=jnp.int32)
    max_off = int(np.abs(offsets_np).max()) if offsets_np.size else 0

    # Injective integer key over (batch, shifted x, y, z).
    # TODO(synk): int32 keys can overflow for very large grid extents / batch
    #             counts; a split (batch,z)/(x,y) key or int64 would be safer.
    mins = jnp.min(xyz, axis=0) - max_off
    dims = jnp.max(xyz, axis=0) - mins + max_off + 1

    def encode(p, b):
        s = p - mins
        return ((b * dims[0] + s[..., 0]) * dims[1] + s[..., 1]) * dims[2] + s[..., 2]

    keys = encode(xyz, batch)
    order = jnp.argsort(keys)
    skeys = keys[order]

    q_xyz = xyz[:, None, :] + offsets[None, :, :]            # (N, K, 3)
    q_b = jnp.broadcast_to(batch[:, None], (n, K))           # (N, K)
    qkeys = encode(q_xyz, q_b).reshape(-1)                   # (N*K,)

    pos = jnp.clip(jnp.searchsorted(skeys, qkeys), 0, n - 1)
    found = skeys[pos] == qkeys
    idx = jnp.where(found, order[pos], n)                    # n -> zero-pad row
    return idx.reshape(n, K)


def sparse_conv3d(feats, coords, kernel, bias=None, kernel_size=3, stride=1,
                  dilation=1, transpose=False, compute_dtype=jnp.bfloat16):
    """Forward pass of torchsparse Conv3d (stride=1 path)."""
    assert stride == 1, "stride>1 output-coordinate downsampling not implemented"
    # TODO(synk): transposed conv (reversed kernel map w/ strided coords) not implemented.
    assert not transpose

    n, c_in = feats.shape
    K = int(kernel_size) ** 3
    feats_c = feats.astype(compute_dtype)

    if K == 1:
        g2 = feats_c                                         # (N, C_in)
        w2 = kernel.reshape(c_in, -1)                        # (C_in, C_out)
    else:
        offsets_np = _kernel_offsets(kernel_size, dilation)
        idx_nk = _build_gather_indices(coords, offsets_np)   # (N, K)
        feats_z = jnp.concatenate(
            [feats_c, jnp.zeros((1, c_in), compute_dtype)], axis=0)
        # Direct (N, K, C_in) gather in the compute dtype: the reshape to
        # (N, K*C_in) is free (row-major) -- no HBM transpose pass.
        g2 = feats_z[idx_nk].reshape(n, K * c_in)
        w2 = kernel.reshape(K * c_in, -1)                    # (K*C_in, C_out)

    kc = g2.shape[1]
    c_out = w2.shape[-1]
    in_item = jnp.dtype(compute_dtype).itemsize
    out_dtype = feats.dtype
    out_item = jnp.dtype(out_dtype).itemsize

    mxu = _mxu_width()
    budget, cap = _vmem_budget()
    cout_pad = _pad_dim(c_out, mxu)
    gran = 128 if (kc <= 128 or mxu == 128) else mxu         # contraction tile granularity

    # Row-tile: as large as the generation allows (amortizes ~0.35us/step).
    tn_max = 512 if cap <= 64 * 1024 * 1024 else 1024
    tn = 128
    while tn < tn_max and tn * 2 <= _round_up(n, 128):
        tn *= 2
    # Contraction tile: full depth when it fits, otherwise tiled (acc scratch).
    tkc = min(_round_up(kc, gran), 2048)

    def usage(tn_, tkc_):
        return (2 * tn_ * tkc_ * in_item          # G tile, double-buffered
                + 2 * tkc_ * cout_pad * in_item   # W tile, double-buffered
                + 2 * tn_ * cout_pad * out_item   # output tile, double-buffered
                + tn_ * cout_pad * 4              # f32 accumulator scratch
                + 2 * cout_pad * 4)               # bias

    while usage(tn, tkc) > budget and (tn > 128 or tkc > gran):
        if tkc > gran and tkc >= tn:
            tkc = max(gran, _round_up(tkc // 2, gran))
        else:
            tn = max(128, tn // 2)

    kc_pad = _round_up(kc, tkc)
    n_pad = _round_up(n, tn)

    g2 = jnp.pad(g2, ((0, n_pad - n), (0, kc_pad - kc)))
    w2 = jnp.pad(w2.astype(compute_dtype),
                 ((0, kc_pad - kc), (0, cout_pad - c_out)))

    if bias is None:
        bias2 = jnp.zeros((1, cout_pad), jnp.float32)
    else:
        bias2 = jnp.pad(bias.astype(jnp.float32),
                        (0, cout_pad - c_out)).reshape(1, cout_pad)

    est = usage(tn, tkc)
    vmem_limit = None
    if est > 12 * 1024 * 1024:
        # Raise the scoped VMEM limit only when needed; keep generation-aware
        # headroom (cap*3/4 -> 48 MiB on v7x, 96 MiB on v5e/v6e).
        vmem_limit = min(max(est * 3 // 2 + (2 << 20), 32 << 20), cap * 3 // 4)

    out = _pallas_conv_matmul(g2, w2, bias2, out_dtype,
                              tn=tn, tkc=tkc, vmem_limit=vmem_limit)
    return out[:n, :c_out]


# ----------------------------------------------------------------------------
# Deterministic parameter init (matches Conv3d.init_weight)
# ----------------------------------------------------------------------------
def init_conv3d_params(key, in_channels, out_channels, kernel_size=3,
                       bias=False, transpose=False):
    K = kernel_size ** 3
    std = 1.0 / math.sqrt(out_channels if transpose else in_channels * K)
    k_key, b_key = jax.random.split(key)
    if K > 1:
        kernel = jax.random.uniform(k_key, (K, in_channels, out_channels),
                                    minval=-std, maxval=std, dtype=jnp.float32)
    else:
        kernel = jax.random.uniform(k_key, (in_channels, out_channels),
                                    minval=-std, maxval=std, dtype=jnp.float32)
    b = (jax.random.uniform(b_key, (out_channels,), minval=-std, maxval=std,
                            dtype=jnp.float32) if bias else None)
    return kernel, b


# ----------------------------------------------------------------------------
# Reference (pure JAX, independent dense one-hot match) for sanity check.
# Assumes unique coordinates per batch.
# ----------------------------------------------------------------------------
def _reference(feats, coords, kernel, bias, kernel_size, dilation):
    K = kernel_size ** 3
    if K == 1:
        out = feats @ kernel
    else:
        offsets = jnp.asarray(_kernel_offsets(kernel_size, dilation))
        xyz = coords[:, :3]
        batch = coords[:, 3]
        diff = xyz[None, :, :] - xyz[:, None, :]                  # (N, N, 3)
        same_batch = batch[None, :] == batch[:, None]             # (N, N)
        match = jnp.all(diff[None, :, :, :] == offsets[:, None, None, :], axis=-1)
        match = jnp.logical_and(match, same_batch[None, :, :]).astype(feats.dtype)
        gathered = jnp.einsum("kij,jc->kic", match, feats)        # (K, N, C_in)
        out = jnp.einsum("kic,kco->io", gathered, kernel)
    if bias is not None:
        out = out + bias[None, :]
    return out


if __name__ == "__main__":
    key = jax.random.PRNGKey(0)
    k_c0, k_c1, k_feats, k_params, k_bigf, k_bigp = jax.random.split(key, 6)

    # Small sparse point cloud: N voxels, 2 batches, unique coords in a 4^3 grid.
    N, C_IN, C_OUT, KS = 32, 4, 8, 3
    cells0 = jax.random.permutation(k_c0, 64)[: N // 2].astype(jnp.int32)
    cells1 = jax.random.permutation(k_c1, 64)[: N - N // 2].astype(jnp.int32)
    cells = jnp.concatenate([cells0, cells1])
    xyz = jnp.stack([cells // 16, (cells // 4) % 4, cells % 4], axis=1)
    batch = jnp.concatenate(
        [jnp.zeros((N // 2,), jnp.int32), jnp.ones((N - N // 2,), jnp.int32)])
    coords = jnp.concatenate([xyz, batch[:, None]], axis=1)          # (N, 4)
    feats = jax.random.normal(k_feats, (N, C_IN), dtype=jnp.float32)

    kernel, bias = init_conv3d_params(k_params, C_IN, C_OUT, KS, bias=True)
    ref = _reference(feats, coords, kernel, bias, KS, 1)

    # Default (bf16 compute, f32 accumulation) path.
    out = sparse_conv3d(feats, coords, kernel, bias, kernel_size=KS,
                        stride=1, dilation=1, transpose=False)
    out = jax.block_until_ready(out)
    assert out.shape == (N, C_OUT), out.shape
    assert out.dtype == feats.dtype, out.dtype
    np.testing.assert_allclose(np.asarray(out), np.asarray(ref),
                               rtol=5e-2, atol=2e-2)

    # f32 compute path (tighter check of the gather / padding logic).
    out32 = sparse_conv3d(feats, coords, kernel, bias, kernel_size=KS,
                          compute_dtype=jnp.float32)
    out32 = jax.block_until_ready(out32)
    np.testing.assert_allclose(np.asarray(out32), np.asarray(ref),
                               rtol=1e-2, atol=1e-2)

    # 1x1x1 (pointwise) path.
    k1, b1 = init_conv3d_params(k_params, C_IN, C_OUT, kernel_size=1, bias=False)
    out1 = sparse_conv3d(feats, coords, k1, b1, kernel_size=1)
    out1 = jax.block_until_ready(out1)
    np.testing.assert_allclose(np.asarray(out1), np.asarray(feats @ k1),
                               rtol=5e-2, atol=2e-2)

    # Wide-channel path: K*C_in exceeds the contraction tile, exercising the
    # multi-step accumulator (pl.when init / finalize) across the KC grid axis.
    C_IN_B, C_OUT_B = 128, 32
    feats_b = jax.random.normal(k_bigf, (N, C_IN_B), dtype=jnp.float32)
    kernel_b, bias_b = init_conv3d_params(k_bigp, C_IN_B, C_OUT_B, KS, bias=True)
    ref_b = _reference(feats_b, coords, kernel_b, bias_b, KS, 1)
    out_b = sparse_conv3d(feats_b, coords, kernel_b, bias_b, kernel_size=KS,
                          compute_dtype=jnp.float32)
    out_b = jax.block_until_ready(out_b)
    np.testing.assert_allclose(np.asarray(out_b), np.asarray(ref_b),
                               rtol=1e-2, atol=1e-2)

    print("KERNEL_OK")
</pallas_src>

<mosaic_0001>
module attributes {stable_mosaic.version = 11 : i64} {
  func.func @_conv_mm_kernel(%arg0: i32, %arg1: i32, %arg2: memref<128x128xbf16, #tpu.memory_space<vmem>>, %arg3: memref<128x128xbf16, #tpu.memory_space<vmem>>, %arg4: memref<1x128xf32, #tpu.memory_space<vmem>>, %arg5: memref<128x128xf32, #tpu.memory_space<vmem>>, %arg6: memref<128x128xf32, #tpu.memory_space<vmem>>) attributes {dimension_semantics = [#tpu.dimension_semantics<parallel>, #tpu.dimension_semantics<arbitrary>], iteration_bounds = array<i64: 1, 1>, scalar_prefetch = 0 : i64, scratch_operands = 1 : i64, tpu.core_type = #tpu.core_type<tc>, window_params = [{transform_indices = @transform_0, window_bounds = array<i64: 128, 128>}, {transform_indices = @transform_1, window_bounds = array<i64: 128, 128>}, {pipeline_mode = #tpu.pipeline_mode<synchronous>, transform_indices = @transform_2, window_bounds = array<i64: 1, 128>}, {transform_indices = @transform_3, window_bounds = array<i64: 128, 128>}]} {
    %c0_i32 = arith.constant 0 : i32
    %0 = arith.cmpi eq, %arg1, %c0_i32 : i32
    %1 = arith.extui %0 : i1 to i32
    %c0_i32_0 = arith.constant 0 : i32
    %2 = arith.cmpi ne, %1, %c0_i32_0 : i32
    scf.if %2 {
      %cst_10 = arith.constant 0.000000e+00 : f32
      %12 = vector.broadcast %cst_10 : f32 to vector<128x128xf32>
      %c0_11 = arith.constant 0 : index
      %c0_12 = arith.constant 0 : index
      %13 = vector.load %arg6[%c0_11, %c0_12] : memref<128x128xf32, #tpu.memory_space<vmem>>, vector<128x128xf32>
      tpu.vector_store %arg6[%c0_11, %c0_12], %12 {strides = array<i32>} : memref<128x128xf32, #tpu.memory_space<vmem>>, vector<128x128xf32>,
    } else {
    }
    %c0 = arith.constant 0 : index
    %c0_1 = arith.constant 0 : index
    %3 = vector.load %arg6[%c0, %c0_1] : memref<128x128xf32, #tpu.memory_space<vmem>>, vector<128x128xf32>
    %c0_2 = arith.constant 0 : index
    %c0_3 = arith.constant 0 : index
    %4 = vector.load %arg2[%c0_2, %c0_3] : memref<128x128xbf16, #tpu.memory_space<vmem>>, vector<128x128xbf16>
    %c0_4 = arith.constant 0 : index
    %c0_5 = arith.constant 0 : index
    %5 = vector.load %arg3[%c0_4, %c0_5] : memref<128x128xbf16, #tpu.memory_space<vmem>>, vector<128x128xbf16>
    %cst = arith.constant dense<0.000000e+00> : vector<128x128xf32>
    %6 = tpu.matmul %4, %5, %cst {dimension_numbers = #tpu.dot_dimension_numbers<[1], [0], [0], [1], [0, 0, 1, 1], [], []>} : vector<128x128xbf16>, vector<128x128xbf16>, vector<128x128xf32> -> vector<128x128xf32>
    %7 = arith.addf %3, %6 : vector<128x128xf32>
    %c0_6 = arith.constant 0 : index
    %c0_7 = arith.constant 0 : index
    %8 = vector.load %arg6[%c0_6, %c0_7] : memref<128x128xf32, #tpu.memory_space<vmem>>, vector<128x128xf32>
    tpu.vector_store %arg6[%c0_6, %c0_7], %7 {strides = array<i32>} : memref<128x128xf32, #tpu.memory_space<vmem>>, vector<128x128xf32>,
    %c0_i32_8 = arith.constant 0 : i32
    %9 = arith.cmpi eq, %arg1, %c0_i32_8 : i32
    %10 = arith.extui %9 : i1 to i32
    %c0_i32_9 = arith.constant 0 : i32
    %11 = arith.cmpi ne, %10, %c0_i32_9 : i32
    scf.if %11 {
      %c0_10 = arith.constant 0 : index
      %c0_11 = arith.constant 0 : index
      %12 = vector.load %arg6[%c0_10, %c0_11] : memref<128x128xf32, #tpu.memory_space<vmem>>, vector<128x128xf32>
      %c0_12 = arith.constant 0 : index
      %c0_13 = arith.constant 0 : index
      %13 = vector.load %arg4[%c0_12, %c0_13] : memref<1x128xf32, #tpu.memory_space<vmem>>, vector<1x128xf32>
      %14 = vector.broadcast %13 : vector<1x128xf32> to vector<128x128xf32>
      %15 = arith.addf %12, %14 : vector<128x128xf32>
      %c0_14 = arith.constant 0 : index
      %c0_15 = arith.constant 0 : index
      %16 = vector.load %arg5[%c0_14, %c0_15] : memref<128x128xf32, #tpu.memory_space<vmem>>, vector<128x128xf32>
      tpu.vector_store %arg5[%c0_14, %c0_15], %15 {strides = array<i32>} : memref<128x128xf32, #tpu.memory_space<vmem>>, vector<128x128xf32>,
    } else {
    }
    return
  }
  func.func @transform_0(%arg0: i32, %arg1: i32) -> (i32, i32) {
    %c0_i32 = arith.constant 0 : i32
    return %arg0, %arg1 : i32, i32
  }
  func.func @transform_1(%arg0: i32, %arg1: i32) -> (i32, i32) {
    %c0_i32 = arith.constant 0 : i32
    %c0_i32_0 = arith.constant 0 : i32
    return %arg1, %c0_i32 : i32, i32
  }
  func.func @transform_2(%arg0: i32, %arg1: i32) -> (i32, i32) {
    %c0_i32 = arith.constant 0 : i32
    %c0_i32_0 = arith.constant 0 : i32
    %c0_i32_1 = arith.constant 0 : i32
    return %c0_i32, %c0_i32_0 : i32, i32
  }
  func.func @transform_3(%arg0: i32, %arg1: i32) -> (i32, i32) {
    %c0_i32 = arith.constant 0 : i32
    %c0_i32_0 = arith.constant 0 : i32
    return %arg0, %c0_i32 : i32, i32
  }
}

</mosaic_0001>

<bundles_post_ra>
// kernel: tpu_custom_call.1
= control target key start
LH: loop header
LB: loop body
LE: loop exit
PB: predicated region body
PF: predicated region fallthrough
CT: control target
= control target key end

     0   :  { %8 = vsyncpa [#allocation4], 0  ;;  %s622_s0 = inlined_call_operand.hbm [shape: bf16[128,128], index: 0, kind: input, shape index: {}]   ;;  %s623_s1 = inlined_call_operand.hbm [shape: bf16[128,128], index: 1, kind: input, shape index: {}]   ;;  %s624_s2 = inlined_call_operand.vmem [shape: f32[1,128], index: 2, kind: input, shape index: {}]   ;;  %s625_s3 = inlined_call_operand.hbm [shape: f32[128,128], index: 3, kind: output, shape index: {}]  }
   0x1   :  { %9 = vsyncpa [#allocation7], 0 }
   0x2   :  { %10 = vsyncpa [#allocation5], 0  ;;  %s583_s12 = smov [#allocation3]  }
   0x3   :  { %s16_s13 = sshll.u32 %s583_s12, 4  ;;  %s17_s13 = int_to_ptr.vmem [resolvable:$true] %s16_s13 }
   0x4   :  { %s525_s14 = scalar_lea.vmem %s17_s13, 1024  ;;  %p530_p1 = scmp.lt.s32.totalorder %s17_s13, %s17_s13 }
   0x5   :  { %p526_p0 = scmp.ne.s32.totalorder %s17_s13, %s525_s14  ;;  %p531_p2 = scmp.lt.s32.totalorder %s525_s14, %s525_s14 }
   0x7   :  { %p532_p3 = por %p531_p2, %p530_p1 }
   0x9   :  { %p533_p4 = pnand %p532_p3, %p526_p0 }
   0xb   :  { %536 = shalt.err (!%p533_p4)
}
   0xc   :  { %s584_s15 = smov 64   ;;  %s585_s16 = smov 4  }
   0xd   :  { %22 = dma.hbm_to_vmem [thread:$0]  %s622_s0, 1024, %s17_s13, [#allocation4], %s584_s15, %s584_s15, %s585_s16  }
   0xe   :  { %s586_s19 = smov [#allocation6]  }
   0xf   :  { %s28_s20 = sshll.u32 %s586_s19, 4  ;;  %s29_s20 = int_to_ptr.vmem [resolvable:$true] %s28_s20 }
  0x10   :  { %s545_s21 = scalar_lea.vmem %s29_s20, 1024  ;;  %p550_p6 = scmp.lt.s32.totalorder %s29_s20, %s29_s20 }
  0x11   :  { %p546_p5 = scmp.ne.s32.totalorder %s29_s20, %s545_s21  ;;  %p551_p7 = scmp.lt.s32.totalorder %s545_s21, %s545_s21 }
  0x13   :  { %p552_p8 = por %p551_p7, %p550_p6 }
  0x15   :  { %p553_p9 = pnand %p552_p8, %p546_p5 }
  0x17   :  { %556 = shalt.err (!%p553_p9)
}
  0x18   :  { %34 = dma.hbm_to_vmem [thread:$0]  %s623_s1, 1024, %s29_s20, [#allocation7], %s584_s15, %s584_s15, %s585_s16  }
  0x19   :  { %577 = dma.done.wait [#allocation4], 1024  }
  0x1a   :  { %578 = vsyncadd [#allocation4], 4294966272 }
  0x1b   :  { %579 = dma.done.wait [#allocation7], 1024  }
  0x1c   :  { %580 = vsyncadd [#allocation7], 4294966272  ;;  %v501_v0 = vld [vmem:[#allocation6 + $0x38] sm:$0xff]   ;;  %v502_v1 = vld [vmem:[#allocation6 + $0x30] sm:$0xff]  }
  0x1d   :  { %446 = vmatprep.subr.bf16.mxu0 %v501_v0  ;;  %478 = vmatprep.subr.bf16.mxu1 %v501_v0  ;;  %v503_v2 = vld [vmem:[#allocation6 + $0x28] sm:$0xff]   ;;  %v504_v3 = vld [vmem:[#allocation6 + $0x20] sm:$0xff]   ;;  %v505_v6 = vld [vmem:[#allocation6 + $0x18] sm:$0xff]  }
  0x1e   :  { %447 = vmatpush3.bf16.msra.mxu0 %v501_v0  ;;  %486 = vmatpush3.bf16.msra.mxu1 %v501_v0  ;;  %v509_v4 = vld [vmem:[#allocation3] sm:$0xff]   ;;  %v506_v7 = vld [vmem:[#allocation6 + $0x10] sm:$0xff]   ;;  %v507_v8 = vld [vmem:[#allocation6 + $0x8] sm:$0xff]  }
  0x1f   :  { %448 = vmatprep.subr.bf16.mxu0 %v502_v1  ;;  %479 = vmatprep.subr.bf16.mxu1 %v502_v1  ;;  %v510_v5 = vld [vmem:[#allocation3 + $0x20] sm:$0xff]   ;;  %v511_v10 = vld [vmem:[#allocation3 + $0x8] sm:$0xff]   ;;  %v513_v12 = vld [vmem:[#allocation3 + $0x10] sm:$0xff]  }
  0x20   :  { %462 = vmatprep.mubr.bf16.mxu0 %v509_v4  ;;  %470 = vmatprep.mubr.bf16.mxu1 %v510_v5  ;;  %v508_v9 = vld [vmem:[#allocation6] sm:$0xff]   ;;  %v512_v11 = vld [vmem:[#allocation3 + $0x28] sm:$0xff]   ;;  %v514_v13 = vld [vmem:[#allocation3 + $0x30] sm:$0xff]  }
  0x21   :  { %v515_v14 = vld [vmem:[#allocation3 + $0x18] sm:$0xff]   ;;  %v429_v16 = vld [vmem:[%s624_s2] ss:$0 sm:$0xff]  ;;  %s587_s2 = smov [#allocation8]  }
  0x22   :  { %449 = vmatpush3.bf16.msra.mxu0 %v502_v1  ;;  %487 = vmatpush3.bf16.msra.mxu1 %v502_v1  ;;  %v516_v15 = vld [vmem:[#allocation3 + $0x38] sm:$0xff]   ;;  %s400_s24 = sshll.u32 %s587_s2, 4  ;;  %s401_s24 = int_to_ptr.vmem [resolvable:$true] %s400_s24 }
  0x23   :  { %450 = vmatprep.subr.bf16.mxu0 %v503_v2  ;;  %480 = vmatprep.subr.bf16.mxu1 %v503_v2  ;;  %s557_s25 = scalar_lea.vmem %s401_s24, 2048  ;;  %p562_p11 = scmp.lt.s32.totalorder %s401_s24, %s401_s24 }
  0x24   :  { %p558_p10 = scmp.ne.s32.totalorder %s401_s24, %s557_s25  ;;  %p563_p12 = scmp.lt.s32.totalorder %s557_s25, %s557_s25 }
  0x26   :  { %451 = vmatpush3.bf16.msra.mxu0 %v503_v2  ;;  %488 = vmatpush3.bf16.msra.mxu1 %v503_v2  ;;  %p564_p13 = por %p563_p12, %p562_p11 }
  0x27   :  { %452 = vmatprep.subr.bf16.mxu0 %v504_v3  ;;  %481 = vmatprep.subr.bf16.mxu1 %v504_v3 }
  0x28   :  { %p565_p0 = pnand %p564_p13, %p558_p10 }
  0x2a   :  { %453 = vmatpush3.bf16.msra.mxu0 %v504_v3  ;;  %489 = vmatpush3.bf16.msra.mxu1 %v504_v3 }
  0x2b   :  { %454 = vmatprep.subr.bf16.mxu0 %v505_v6  ;;  %482 = vmatprep.subr.bf16.mxu1 %v505_v6 }
  0x2e   :  { %455 = vmatpush3.bf16.msra.mxu0 %v505_v6  ;;  %490 = vmatpush3.bf16.msra.mxu1 %v505_v6 }
  0x2f   :  { %456 = vmatprep.subr.bf16.mxu0 %v506_v7  ;;  %483 = vmatprep.subr.bf16.mxu1 %v506_v7 }
  0x32   :  { %457 = vmatpush3.bf16.msra.mxu0 %v506_v7  ;;  %491 = vmatpush3.bf16.msra.mxu1 %v506_v7 }
  0x33   :  { %458 = vmatprep.subr.bf16.mxu0 %v507_v8  ;;  %484 = vmatprep.subr.bf16.mxu1 %v507_v8 }
  0x36   :  { %459 = vmatpush3.bf16.msra.mxu0 %v507_v8  ;;  %492 = vmatpush3.bf16.msra.mxu1 %v507_v8 }
  0x37   :  { %460 = vmatprep.subr.bf16.mxu0 %v508_v9  ;;  %485 = vmatprep.subr.bf16.mxu1 %v508_v9 }
  0x3a   :  { %461 = vmatpush3.bf16.msra.mxu0 %v508_v9  ;;  %493 = vmatpush3.bf16.msra.mxu1 %v508_v9 }
  0x3d   :  { %463 = vmatmul.mubr.bf16.vlgmr.msra.gmra.mxu0 %v511_v10  ;;  %471 = vmatmul.mubr.bf16.vlgmr.msra.gmra.mxu1 %v512_v11 }
  0x3e   :  { %466 = vmatprep.mubr.bf16.mxu0 %v513_v12  ;;  %474 = vmatprep.mubr.bf16.mxu1 %v514_v13 }
  0x45   :  { %467 = vmatmul.mubr.bf16.gmra.mxu0 %v515_v14  ;;  %475 = vmatmul.mubr.bf16.gmra.mxu1 %v516_v15 }
  0xfd   :  { %v464_v17 = vpop.f32.mrf.mxu0  ;;  %v472_v18 = vpop.f32.mrf.mxu1 }
  0xfe   :  { %v365_v19 = vadd.f32 %v464_v17, %v429_v16  ;;  %v373_v20 = vadd.f32 %v472_v18, %v429_v16 }
  0xff   :  { %v242_v21 = vpop.f32.mrf.mxu0  ;;  %v274_v22 = vpop.f32.mrf.mxu1 }
 0x100   :  { %381 = vst [vmem:[#allocation8 + $0x10] sm:$0xff] %v365_v19  ;;  %389 = vst [vmem:[#allocation8 + $0x50] sm:$0xff] %v373_v20  ;;  %v363_v23 = vadd.f32 %v429_v16, %v242_v21  ;;  %v371_v24 = vadd.f32 %v429_v16, %v274_v22 }
 0x101   :  { %v465_v25 = vpop.f32.mrf.mxu0  ;;  %v473_v26 = vpop.f32.mrf.mxu1 }
 0x102   :  { %379 = vst [vmem:[#allocation8] sm:$0xff] %v363_v23  ;;  %387 = vst [vmem:[#allocation8 + $0x40] sm:$0xff] %v371_v24  ;;  %v366_v27 = vadd.f32 %v465_v25, %v429_v16  ;;  %v374_v28 = vadd.f32 %v473_v26, %v429_v16 }
 0x103   :  { %v245_v29 = vpop.f32.mrf.mxu0  ;;  %v277_v30 = vpop.f32.mrf.mxu1 }
 0x104   :  { %382 = vst [vmem:[#allocation8 + $0x18] sm:$0xff] %v366_v27  ;;  %390 = vst [vmem:[#allocation8 + $0x58] sm:$0xff] %v374_v28  ;;  %v364_v31 = vadd.f32 %v429_v16, %v245_v29  ;;  %v372_v32 = vadd.f32 %v429_v16, %v277_v30 }
 0x105   :  { %v468_v33 = vpop.f32.mrf.mxu0  ;;  %v476_v34 = vpop.f32.mrf.mxu1 }
 0x106   :  { %380 = vst [vmem:[#allocation8 + $0x8] sm:$0xff] %v364_v31  ;;  %388 = vst [vmem:[#allocation8 + $0x48] sm:$0xff] %v372_v32  ;;  %v369_v35 = vadd.f32 %v468_v33, %v429_v16  ;;  %v377_v36 = vadd.f32 %v476_v34, %v429_v16 }
 0x107   :  { %v258_v37 = vpop.f32.mrf.mxu0  ;;  %v290_v38 = vpop.f32.mrf.mxu1 }
 0x108   :  { %385 = vst [vmem:[#allocation8 + $0x30] sm:$0xff] %v369_v35  ;;  %393 = vst [vmem:[#allocation8 + $0x70] sm:$0xff] %v377_v36  ;;  %v367_v39 = vadd.f32 %v429_v16, %v258_v37  ;;  %v375_v40 = vadd.f32 %v429_v16, %v290_v38 }
 0x109   :  { %v469_v41 = vpop.f32.mrf.mxu0  ;;  %v477_v42 = vpop.f32.mrf.mxu1 }
 0x10a   :  { %383 = vst [vmem:[#allocation8 + $0x20] sm:$0xff] %v367_v39  ;;  %391 = vst [vmem:[#allocation8 + $0x60] sm:$0xff] %v375_v40  ;;  %v370_v43 = vadd.f32 %v469_v41, %v429_v16  ;;  %v378_v44 = vadd.f32 %v477_v42, %v429_v16 }
 0x10b   :  { %v261_v45 = vpop.f32.mrf.mxu0  ;;  %v293_v46 = vpop.f32.mrf.mxu1 }
 0x10c   :  { %386 = vst [vmem:[#allocation8 + $0x38] sm:$0xff] %v370_v43  ;;  %394 = vst [vmem:[#allocation8 + $0x78] sm:$0xff] %v378_v44  ;;  %v368_v47 = vadd.f32 %v429_v16, %v261_v45  ;;  %v376_v48 = vadd.f32 %v429_v16, %v293_v46 }
 0x10e   :  { %384 = vst [vmem:[#allocation8 + $0x28] sm:$0xff] %v368_v47  ;;  %392 = vst [vmem:[#allocation8 + $0x68] sm:$0xff] %v376_v48 }
 0x10f   :  { %568 = shalt.err (!%p565_p0)
}
 0x110   :  { %s588_s26 = smov 128   ;;  %s589_s27 = smov 8  }
 0x111   :  { %406 = dma.vmem_to_hbm [thread:$0]  %s401_s24, 2048, %s625_s3, [#allocation5], %s588_s26, %s588_s26, %s589_s27  }
 0x112   :  { %581 = dma.done.wait [#allocation5], 2048  }
 0x113   :  { %582 = vsyncadd [#allocation5], 4294965248 }
 0x114   :  { %410 = vsyncpa [#allocation4], 1 }
 0x115   :  { %411 = vsyncpa [#allocation7], 1 }
 0x116   :  { %412 = vsyncpa [#allocation5], 1 }

</bundles_post_ra>
